<compile_context>
chip_gen: v7x
topology: tpu7x:2x2x1
jax: 0.10.0
libtpu: 0.0.40
codegen_flags: <defaults>
</compile_context>

<pallas_src>
import functools

import jax
import jax.numpy as jnp
from jax.experimental import pallas as pl
from jax.experimental.pallas import tpu as pltpu

DILATIONS = (1, 3, 5)
NB = len(DILATIONS)
D_MAX = max(DILATIONS)
BN_EPS = 1e-5


# ---------------------------------------------------------------------------
# Kernel 1: fused 3-branch dilated conv + partial BN statistics, one image/step
# ---------------------------------------------------------------------------
def conv_stats_kernel(x_ref, wmid_ref, woff_ref, y_ref, stat_ref,
                      *, H, d_max, dils, wc):
    """x_ref:    (1, Hp, Kp)      bf16 padded input rows, lane-dense (Kp % 128 == 0)
       wmid_ref: (Kp, NB*wc)      bf16 banded kh=1 weights, all branches concat along N
       woff_ref: (NB, 2, Kp, wc)  bf16 banded kh=0 / kh=2 weights per branch
       y_ref:    (1, NB, H, wc)   bf16 conv outputs, lane-dense
       stat_ref: (1, 2*NB, wc)    f32; rows 2b / 2b+1: per-lane sum / sum-of-squares
    """
    # kh = 1 tap: all branches share the same row window -> one wide matmul.
    a_mid = x_ref[0, d_max:d_max + H, :]                          # (H, Kp) bf16
    y_mid = jnp.dot(a_mid, wmid_ref[...],
                    preferred_element_type=jnp.float32)           # (H, NB*wc) f32

    for b, d in enumerate(dils):                                  # static unroll
        acc = y_mid[:, b * wc:(b + 1) * wc]                       # (H, wc) f32
        for j, kh in enumerate((0, 2)):                           # remaining row taps
            h0 = d_max + (kh - 1) * d                             # static row offset
            # TODO(synk): h0 is not always sublane-aligned; if Mosaic materializes
            #             a re-layout copy here, pre-shift the row windows once
            #             into a VMEM scratch instead of slicing per dot.
            a = x_ref[0, h0:h0 + H, :]                            # (H, Kp) bf16
            acc = acc + jnp.dot(a, woff_ref[b, j],
                                preferred_element_type=jnp.float32)
        y_ref[0, b] = acc.astype(y_ref.dtype)                     # bf16 store
        # f32-accumulated partial BN stats, direct per-row stores (no concat).
        stat_ref[0, 2 * b:2 * b + 1, :] = jnp.sum(acc, axis=0, keepdims=True)
        stat_ref[0, 2 * b + 1:2 * b + 2, :] = jnp.sum(acc * acc, axis=0,
                                                      keepdims=True)


# ---------------------------------------------------------------------------
# Kernel 2: coarse-tiled epilogue — per-branch affine BN + ReLU, sum, final ReLU
# ---------------------------------------------------------------------------
def bn_relu_sum_kernel(y_ref, scale_ref, shift_ref, o_ref, *, nb):
    """y_ref:     (1, NB, TH, wc)  bf16 conv outputs
       scale_ref: (NB, 1, wc)      f32: gamma * rsqrt(var + eps), tiled over W
       shift_ref: (NB, 1, wc)      f32: beta - mean * scale,      tiled over W
       o_ref:     (1, TH, wc)      f32 output
    """
    acc = None
    for b in range(nb):                                           # static unroll
        # Upcast to f32 for the math (v5e has no bf16 VALU; storage-only bf16).
        z = jnp.maximum(y_ref[0, b].astype(jnp.float32) * scale_ref[b]
                        + shift_ref[b], 0.0)
        acc = z if acc is None else acc + z
    # final ReLU (no-op after per-branch ReLUs, kept for module fidelity)
    o_ref[0] = jnp.maximum(acc, 0.0)


# ---------------------------------------------------------------------------
# Weight preprocessing: 3x3 dilated conv -> banded matmul weights (per kh)
# ---------------------------------------------------------------------------
def _banded_weights(w_oihw, d, W, Wp, k_pad):
    """(Cout, Cin, 3, 3) -> (3, k_pad, W*Cout); row (wi*Cin+ci), col (wo*Cout+co)."""
    w_hwio = jnp.transpose(w_oihw, (2, 3, 1, 0)).astype(jnp.float32)   # (3,3,Cin,Cout)
    cin, cout = w_hwio.shape[2], w_hwio.shape[3]
    wi = jnp.arange(Wp)[None, :, None]                 # padded input column
    wo = jnp.arange(W)[None, None, :]                  # output column
    kw = jnp.arange(3)[:, None, None]
    sel = (wi == wo + (kw - 1) * d + D_MAX).astype(jnp.float32)        # (3, Wp, W)
    b6 = jnp.einsum("kvw,hkio->hviwo", sel, w_hwio)                    # (3,Wp,Cin,W,Cout)
    b = b6.reshape(3, Wp * cin, W * cout)
    if k_pad > Wp * cin:                               # zero-pad K to a lane multiple
        b = jnp.pad(b, ((0, 0), (0, k_pad - Wp * cin), (0, 0)))
    return b


# ---------------------------------------------------------------------------
# Wrapper (NCHW in / NCHW out, matching the PyTorch module interface)
# ---------------------------------------------------------------------------
def dilation_conv_forward(x_nchw, params):
    x = jnp.transpose(x_nchw, (0, 2, 3, 1)).astype(jnp.float32)        # NCHW -> NHWC
    N, H, W, Cin = x.shape
    Cout = params[0]["w"].shape[0]
    Hp, Wp = H + 2 * D_MAX, W + 2 * D_MAX
    WC = W * Cout
    K = Wp * Cin
    K_pad = ((K + 127) // 128) * 128                   # lane-align the contraction dim

    # Pad once (largest dilation), present rows lane-dense, pad K to 128, cast bf16.
    xp = jnp.pad(x, ((0, 0), (D_MAX, D_MAX), (D_MAX, D_MAX), (0, 0)))
    x2 = xp.reshape(N, Hp, K)
    if K_pad > K:
        x2 = jnp.pad(x2, ((0, 0), (0, 0), (0, K_pad - K)))
    x2 = x2.astype(jnp.bfloat16)

    # Conv bias intentionally dropped: train-mode BN subtracts the batch mean,
    # which cancels any constant per-channel bias exactly.
    banded = [_banded_weights(p["w"], d, W, Wp, K_pad)
              for p, d in zip(params, DILATIONS)]                      # each (3,K_pad,WC)
    w_mid = jnp.concatenate([b[1] for b in banded], axis=-1).astype(jnp.bfloat16)
    w_off = jnp.stack([jnp.stack([b[0], b[2]]) for b in banded]).astype(jnp.bfloat16)

    w_bytes = 2 * (w_mid.size + w_off.size)
    assert w_bytes < (8 << 20), (
        f"banded weights are {w_bytes} B; tile over the W*Cout axis for this shape")

    y_all, stats = pl.pallas_call(
        functools.partial(conv_stats_kernel, H=H, d_max=D_MAX, dils=DILATIONS, wc=WC),
        out_shape=(
            jax.ShapeDtypeStruct((N, NB, H, WC), jnp.bfloat16),
            jax.ShapeDtypeStruct((N, 2 * NB, WC), jnp.float32),
        ),
        grid=(N,),
        in_specs=[
            pl.BlockSpec((1, Hp, K_pad), lambda n: (n, 0, 0)),
            pl.BlockSpec((K_pad, NB * WC), lambda n: (0, 0)),
            pl.BlockSpec((NB, 2, K_pad, WC), lambda n: (0, 0, 0, 0)),
        ],
        out_specs=(
            pl.BlockSpec((1, NB, H, WC), lambda n: (n, 0, 0, 0)),
            pl.BlockSpec((1, 2 * NB, WC), lambda n: (n, 0, 0)),
        ),
        compiler_params=pltpu.CompilerParams(dimension_semantics=("parallel",)),
    )(x2, w_mid, w_off)

    # Reduce tiny per-image/per-lane stats to per-branch per-channel BN params.
    stats = stats.reshape(N, NB, 2, W, Cout)
    m = N * H * W
    mean = jnp.sum(stats[:, :, 0], axis=(0, 2)) / m                    # (NB, Cout)
    # NOTE: E[y^2]-E[y]^2 in f32 is adequate here (|mean| ~ std); see review.
    var = jnp.sum(stats[:, :, 1], axis=(0, 2)) / m - mean * mean       # biased (train-mode)
    gamma = jnp.stack([p["gamma"] for p in params]).astype(jnp.float32)
    beta = jnp.stack([p["beta"] for p in params]).astype(jnp.float32)
    scale = gamma * jax.lax.rsqrt(var + BN_EPS)                        # (NB, Cout)
    shift = beta - mean * scale
    scale_wc = jnp.broadcast_to(scale[:, None, :], (NB, W, Cout)).reshape(NB, 1, WC)
    shift_wc = jnp.broadcast_to(shift[:, None, :], (NB, W, Cout)).reshape(NB, 1, WC)

    # Coarse epilogue tiles: full image height per step at these sizes; fall back
    # to the largest multiple-of-8 H band that stays within a few MiB otherwise.
    TH = H
    if H % 8 == 0:
        row_bytes = (NB * 2 + 4) * WC                  # bf16 y rows + f32 out row
        max_th = max(8, ((4 << 20) // row_bytes) // 8 * 8)
        if max_th < H:
            TH = max_th
            while H % TH:
                TH -= 8
    out = pl.pallas_call(
        functools.partial(bn_relu_sum_kernel, nb=NB),
        out_shape=jax.ShapeDtypeStruct((N, H, WC), jnp.float32),
        grid=(N, H // TH),
        in_specs=[
            pl.BlockSpec((1, NB, TH, WC), lambda n, t: (n, 0, t, 0)),
            pl.BlockSpec((NB, 1, WC), lambda n, t: (0, 0, 0)),
            pl.BlockSpec((NB, 1, WC), lambda n, t: (0, 0, 0)),
        ],
        out_specs=pl.BlockSpec((1, TH, WC), lambda n, t: (n, t, 0)),
        compiler_params=pltpu.CompilerParams(
            dimension_semantics=("parallel", "parallel")),
    )(y_all, scale_wc, shift_wc)

    out = out.reshape(N, H, W, Cout)
    return jnp.transpose(out, (0, 3, 1, 2))                            # back to NCHW


# ---------------------------------------------------------------------------
# Deterministic parameter init (shapes match the PyTorch __init__)
# ---------------------------------------------------------------------------
def init_params(key, cin, cout):
    params = []
    for i in range(NB):
        k1, k2, k3, k4 = jax.random.split(jax.random.fold_in(key, i), 4)
        params.append(dict(
            w=0.1 * jax.random.normal(k1, (cout, cin, 3, 3), jnp.float32),  # Conv2d OIHW
            b=0.1 * jax.random.normal(k2, (cout,), jnp.float32),            # Conv2d bias
            gamma=1.0 + 0.1 * jax.random.normal(k3, (cout,), jnp.float32),  # BN weight
            beta=0.1 * jax.random.normal(k4, (cout,), jnp.float32),         # BN bias
        ))
    return params


# ---------------------------------------------------------------------------
# Pure-JAX f32 reference (matches PyTorch training-mode forward, bias included)
# ---------------------------------------------------------------------------
def reference(x_nchw, params):
    x = jnp.transpose(x_nchw, (0, 2, 3, 1)).astype(jnp.float32)
    total = 0.0
    for d, p in zip(DILATIONS, params):
        w = jnp.transpose(p["w"], (2, 3, 1, 0))
        y = jax.lax.conv_general_dilated(
            x, w, window_strides=(1, 1), padding=[(d, d), (d, d)],
            rhs_dilation=(d, d),
            dimension_numbers=("NHWC", "HWIO", "NHWC")) + p["b"]
        mean = y.mean(axis=(0, 1, 2), keepdims=True)
        var = ((y - mean) ** 2).mean(axis=(0, 1, 2), keepdims=True)
        z = (y - mean) * jax.lax.rsqrt(var + BN_EPS) * p["gamma"] + p["beta"]
        total = total + jnp.maximum(z, 0.0)          # per-branch ReLU (nn.Sequential)
    out = jnp.maximum(total, 0.0)                    # final ReLU
    return jnp.transpose(out, (0, 3, 1, 2))


if __name__ == "__main__":
    key = jax.random.PRNGKey(0)
    kx, kp = jax.random.split(key)
    cin, cout = 4, 8
    x = jax.random.normal(kx, (2, cin, 16, 16), jnp.float32)   # NCHW, like the module
    params = init_params(kp, cin, cout)

    fwd = jax.jit(dilation_conv_forward)
    out = jax.block_until_ready(fwd(x, params))

    ref = reference(x, params)
    assert out.shape == (2, cout, 16, 16), out.shape
    err = float(jnp.max(jnp.abs(out - ref)))
    # Tolerance reflects the intentional bf16 input/intermediate storage
    # (~2^-9 relative on O(1) BN-scaled activations across 3 summed branches);
    # a structural bug would produce errors ~O(1).
    assert err < 5e-2, f"max abs err {err}"
    print("KERNEL_OK")
</pallas_src>

<mosaic_0001>
module attributes {stable_mosaic.version = 11 : i64} {
  func.func @conv_stats_kernel(%arg0: i32, %arg1: memref<1x26x128xbf16, #tpu.memory_space<vmem>>, %arg2: memref<128x384xbf16, #tpu.memory_space<vmem>>, %arg3: memref<3x2x128x128xbf16, #tpu.memory_space<vmem>>, %arg4: memref<1x3x16x128xbf16, #tpu.memory_space<vmem>>, %arg5: memref<1x6x128xf32, #tpu.memory_space<vmem>>) attributes {dimension_semantics = [#tpu.dimension_semantics<parallel>], iteration_bounds = array<i64: 2>, scalar_prefetch = 0 : i64, scratch_operands = 0 : i64, tpu.core_type = #tpu.core_type<tc>, window_params = [{transform_indices = @transform_0, window_bounds = array<i64: 1, 26, 128>}, {pipeline_mode = #tpu.pipeline_mode<synchronous>, transform_indices = @transform_1, window_bounds = array<i64: 128, 384>}, {pipeline_mode = #tpu.pipeline_mode<synchronous>, transform_indices = @transform_2, window_bounds = array<i64: 3, 2, 128, 128>}, {transform_indices = @transform_3, window_bounds = array<i64: 1, 3, 16, 128>}, {transform_indices = @transform_4, window_bounds = array<i64: 1, 6, 128>}]} {
    %c0 = arith.constant 0 : index
    %c5 = arith.constant 5 : index
    %c0_0 = arith.constant 0 : index
    %0 = vector.load %arg1[%c0, %c5, %c0_0] : memref<1x26x128xbf16, #tpu.memory_space<vmem>>, vector<1x16x128xbf16>
    %1 = vector.shape_cast %0 : vector<1x16x128xbf16> to vector<16x128xbf16>
    %c0_1 = arith.constant 0 : index
    %c0_2 = arith.constant 0 : index
    %2 = vector.load %arg2[%c0_1, %c0_2] : memref<128x384xbf16, #tpu.memory_space<vmem>>, vector<128x384xbf16>
    %cst = arith.constant dense<0.000000e+00> : vector<16x384xf32>
    %3 = tpu.matmul %1, %2, %cst {dimension_numbers = #tpu.dot_dimension_numbers<[1], [0], [0], [1], [0, 0, 1, 1], [], []>} : vector<16x128xbf16>, vector<128x384xbf16>, vector<16x384xf32> -> vector<16x384xf32>
    %4 = vector.extract_strided_slice %3 {offsets = [0, 0], sizes = [16, 128], strides = [1, 1]} : vector<16x384xf32> to vector<16x128xf32>
    %c0_3 = arith.constant 0 : index
    %c4 = arith.constant 4 : index
    %c0_4 = arith.constant 0 : index
    %5 = vector.load %arg1[%c0_3, %c4, %c0_4] : memref<1x26x128xbf16, #tpu.memory_space<vmem>>, vector<1x16x128xbf16>
    %6 = vector.shape_cast %5 : vector<1x16x128xbf16> to vector<16x128xbf16>
    %c0_5 = arith.constant 0 : index
    %c0_6 = arith.constant 0 : index
    %c0_7 = arith.constant 0 : index
    %c0_8 = arith.constant 0 : index
    %7 = vector.load %arg3[%c0_5, %c0_6, %c0_7, %c0_8] : memref<3x2x128x128xbf16, #tpu.memory_space<vmem>>, vector<1x1x128x128xbf16>
    %8 = vector.shape_cast %7 : vector<1x1x128x128xbf16> to vector<128x128xbf16>
    %cst_9 = arith.constant dense<0.000000e+00> : vector<16x128xf32>
    %9 = tpu.matmul %6, %8, %cst_9 {dimension_numbers = #tpu.dot_dimension_numbers<[1], [0], [0], [1], [0, 0, 1, 1], [], []>} : vector<16x128xbf16>, vector<128x128xbf16>, vector<16x128xf32> -> vector<16x128xf32>
    %10 = arith.addf %4, %9 : vector<16x128xf32>
    %c0_10 = arith.constant 0 : index
    %c6 = arith.constant 6 : index
    %c0_11 = arith.constant 0 : index
    %11 = vector.load %arg1[%c0_10, %c6, %c0_11] : memref<1x26x128xbf16, #tpu.memory_space<vmem>>, vector<1x16x128xbf16>
    %12 = vector.shape_cast %11 : vector<1x16x128xbf16> to vector<16x128xbf16>
    %c0_12 = arith.constant 0 : index
    %c1 = arith.constant 1 : index
    %c0_13 = arith.constant 0 : index
    %c0_14 = arith.constant 0 : index
    %13 = vector.load %arg3[%c0_12, %c1, %c0_13, %c0_14] : memref<3x2x128x128xbf16, #tpu.memory_space<vmem>>, vector<1x1x128x128xbf16>
    %14 = vector.shape_cast %13 : vector<1x1x128x128xbf16> to vector<128x128xbf16>
    %cst_15 = arith.constant dense<0.000000e+00> : vector<16x128xf32>
    %15 = tpu.matmul %12, %14, %cst_15 {dimension_numbers = #tpu.dot_dimension_numbers<[1], [0], [0], [1], [0, 0, 1, 1], [], []>} : vector<16x128xbf16>, vector<128x128xbf16>, vector<16x128xf32> -> vector<16x128xf32>
    %16 = arith.addf %10, %15 : vector<16x128xf32>
    %17 = arith.truncf %16 : vector<16x128xf32> to vector<16x128xbf16>
    %c0_16 = arith.constant 0 : index
    %c0_17 = arith.constant 0 : index
    %c0_18 = arith.constant 0 : index
    %c0_19 = arith.constant 0 : index
    %18 = vector.load %arg4[%c0_16, %c0_17, %c0_18, %c0_19] : memref<1x3x16x128xbf16, #tpu.memory_space<vmem>>, vector<1x1x16x128xbf16>
    %19 = vector.shape_cast %18 : vector<1x1x16x128xbf16> to vector<16x128xbf16>
    %20 = vector.shape_cast %17 : vector<16x128xbf16> to vector<1x1x16x128xbf16>
    tpu.vector_store %arg4[%c0_16, %c0_17, %c0_18, %c0_19], %20 {strides = array<i32>} : memref<1x3x16x128xbf16, #tpu.memory_space<vmem>>, vector<1x1x16x128xbf16>,
    %cst_20 = arith.constant dense<0.000000e+00> : vector<128xf32>
    %21 = vector.multi_reduction <add>, %16, %cst_20 [0] : vector<16x128xf32> to vector<128xf32>
    %22 = vector.shape_cast %21 : vector<128xf32> to vector<1x128xf32>
    %c0_21 = arith.constant 0 : index
    %c0_22 = arith.constant 0 : index
    %c0_23 = arith.constant 0 : index
    %23 = vector.load %arg5[%c0_21, %c0_22, %c0_23] : memref<1x6x128xf32, #tpu.memory_space<vmem>>, vector<1x1x128xf32>
    %24 = vector.shape_cast %23 : vector<1x1x128xf32> to vector<1x128xf32>
    %25 = vector.shape_cast %22 : vector<1x128xf32> to vector<1x1x128xf32>
    tpu.vector_store %arg5[%c0_21, %c0_22, %c0_23], %25 {strides = array<i32>} : memref<1x6x128xf32, #tpu.memory_space<vmem>>, vector<1x1x128xf32>,
    %26 = arith.mulf %16, %16 : vector<16x128xf32>
    %cst_24 = arith.constant dense<0.000000e+00> : vector<128xf32>
    %27 = vector.multi_reduction <add>, %26, %cst_24 [0] : vector<16x128xf32> to vector<128xf32>
    %28 = vector.shape_cast %27 : vector<128xf32> to vector<1x128xf32>
    %c0_25 = arith.constant 0 : index
    %c1_26 = arith.constant 1 : index
    %c0_27 = arith.constant 0 : index
    %29 = vector.load %arg5[%c0_25, %c1_26, %c0_27] : memref<1x6x128xf32, #tpu.memory_space<vmem>>, vector<1x1x128xf32>
    %30 = vector.shape_cast %29 : vector<1x1x128xf32> to vector<1x128xf32>
    %31 = vector.shape_cast %28 : vector<1x128xf32> to vector<1x1x128xf32>
    tpu.vector_store %arg5[%c0_25, %c1_26, %c0_27], %31 {strides = array<i32>} : memref<1x6x128xf32, #tpu.memory_space<vmem>>, vector<1x1x128xf32>,
    %32 = vector.extract_strided_slice %3 {offsets = [0, 128], sizes = [16, 128], strides = [1, 1]} : vector<16x384xf32> to vector<16x128xf32>
    %c0_28 = arith.constant 0 : index
    %c2 = arith.constant 2 : index
    %c0_29 = arith.constant 0 : index
    %33 = vector.load %arg1[%c0_28, %c2, %c0_29] : memref<1x26x128xbf16, #tpu.memory_space<vmem>>, vector<1x16x128xbf16>
    %34 = vector.shape_cast %33 : vector<1x16x128xbf16> to vector<16x128xbf16>
    %c1_30 = arith.constant 1 : index
    %c0_31 = arith.constant 0 : index
    %c0_32 = arith.constant 0 : index
    %c0_33 = arith.constant 0 : index
    %35 = vector.load %arg3[%c1_30, %c0_31, %c0_32, %c0_33] : memref<3x2x128x128xbf16, #tpu.memory_space<vmem>>, vector<1x1x128x128xbf16>
    %36 = vector.shape_cast %35 : vector<1x1x128x128xbf16> to vector<128x128xbf16>
    %cst_34 = arith.constant dense<0.000000e+00> : vector<16x128xf32>
    %37 = tpu.matmul %34, %36, %cst_34 {dimension_numbers = #tpu.dot_dimension_numbers<[1], [0], [0], [1], [0, 0, 1, 1], [], []>} : vector<16x128xbf16>, vector<128x128xbf16>, vector<16x128xf32> -> vector<16x128xf32>
    %38 = arith.addf %32, %37 : vector<16x128xf32>
    %c0_35 = arith.constant 0 : index
    %c8 = arith.constant 8 : index
    %c0_36 = arith.constant 0 : index
    %39 = vector.load %arg1[%c0_35, %c8, %c0_36] : memref<1x26x128xbf16, #tpu.memory_space<vmem>>, vector<1x16x128xbf16>
    %40 = vector.shape_cast %39 : vector<1x16x128xbf16> to vector<16x128xbf16>
    %c1_37 = arith.constant 1 : index
    %c1_38 = arith.constant 1 : index
    %c0_39 = arith.constant 0 : index
    %c0_40 = arith.constant 0 : index
    %41 = vector.load %arg3[%c1_37, %c1_38, %c0_39, %c0_40] : memref<3x2x128x128xbf16, #tpu.memory_space<vmem>>, vector<1x1x128x128xbf16>
    %42 = vector.shape_cast %41 : vector<1x1x128x128xbf16> to vector<128x128xbf16>
    %cst_41 = arith.constant dense<0.000000e+00> : vector<16x128xf32>
    %43 = tpu.matmul %40, %42, %cst_41 {dimension_numbers = #tpu.dot_dimension_numbers<[1], [0], [0], [1], [0, 0, 1, 1], [], []>} : vector<16x128xbf16>, vector<128x128xbf16>, vector<16x128xf32> -> vector<16x128xf32>
    %44 = arith.addf %38, %43 : vector<16x128xf32>
    %45 = arith.truncf %44 : vector<16x128xf32> to vector<16x128xbf16>
    %c0_42 = arith.constant 0 : index
    %c1_43 = arith.constant 1 : index
    %c0_44 = arith.constant 0 : index
    %c0_45 = arith.constant 0 : index
    %46 = vector.load %arg4[%c0_42, %c1_43, %c0_44, %c0_45] : memref<1x3x16x128xbf16, #tpu.memory_space<vmem>>, vector<1x1x16x128xbf16>
    %47 = vector.shape_cast %46 : vector<1x1x16x128xbf16> to vector<16x128xbf16>
    %48 = vector.shape_cast %45 : vector<16x128xbf16> to vector<1x1x16x128xbf16>
    tpu.vector_store %arg4[%c0_42, %c1_43, %c0_44, %c0_45], %48 {strides = array<i32>} : memref<1x3x16x128xbf16, #tpu.memory_space<vmem>>, vector<1x1x16x128xbf16>,
    %cst_46 = arith.constant dense<0.000000e+00> : vector<128xf32>
    %49 = vector.multi_reduction <add>, %44, %cst_46 [0] : vector<16x128xf32> to vector<128xf32>
    %50 = vector.shape_cast %49 : vector<128xf32> to vector<1x128xf32>
    %c0_47 = arith.constant 0 : index
    %c2_48 = arith.constant 2 : index
    %c0_49 = arith.constant 0 : index
    %51 = vector.load %arg5[%c0_47, %c2_48, %c0_49] : memref<1x6x128xf32, #tpu.memory_space<vmem>>, vector<1x1x128xf32>
    %52 = vector.shape_cast %51 : vector<1x1x128xf32> to vector<1x128xf32>
    %53 = vector.shape_cast %50 : vector<1x128xf32> to vector<1x1x128xf32>
    tpu.vector_store %arg5[%c0_47, %c2_48, %c0_49], %53 {strides = array<i32>} : memref<1x6x128xf32, #tpu.memory_space<vmem>>, vector<1x1x128xf32>,
    %54 = arith.mulf %44, %44 : vector<16x128xf32>
    %cst_50 = arith.constant dense<0.000000e+00> : vector<128xf32>
    %55 = vector.multi_reduction <add>, %54, %cst_50 [0] : vector<16x128xf32> to vector<128xf32>
    %56 = vector.shape_cast %55 : vector<128xf32> to vector<1x128xf32>
    %c0_51 = arith.constant 0 : index
    %c3 = arith.constant 3 : index
    %c0_52 = arith.constant 0 : index
    %57 = vector.load %arg5[%c0_51, %c3, %c0_52] : memref<1x6x128xf32, #tpu.memory_space<vmem>>, vector<1x1x128xf32>
    %58 = vector.shape_cast %57 : vector<1x1x128xf32> to vector<1x128xf32>
    %59 = vector.shape_cast %56 : vector<1x128xf32> to vector<1x1x128xf32>
    tpu.vector_store %arg5[%c0_51, %c3, %c0_52], %59 {strides = array<i32>} : memref<1x6x128xf32, #tpu.memory_space<vmem>>, vector<1x1x128xf32>,
    %60 = vector.extract_strided_slice %3 {offsets = [0, 256], sizes = [16, 128], strides = [1, 1]} : vector<16x384xf32> to vector<16x128xf32>
    %c0_53 = arith.constant 0 : index
    %c0_54 = arith.constant 0 : index
    %c0_55 = arith.constant 0 : index
    %61 = vector.load %arg1[%c0_53, %c0_54, %c0_55] : memref<1x26x128xbf16, #tpu.memory_space<vmem>>, vector<1x16x128xbf16>
    %62 = vector.shape_cast %61 : vector<1x16x128xbf16> to vector<16x128xbf16>
    %c2_56 = arith.constant 2 : index
    %c0_57 = arith.constant 0 : index
    %c0_58 = arith.constant 0 : index
    %c0_59 = arith.constant 0 : index
    %63 = vector.load %arg3[%c2_56, %c0_57, %c0_58, %c0_59] : memref<3x2x128x128xbf16, #tpu.memory_space<vmem>>, vector<1x1x128x128xbf16>
    %64 = vector.shape_cast %63 : vector<1x1x128x128xbf16> to vector<128x128xbf16>
    %cst_60 = arith.constant dense<0.000000e+00> : vector<16x128xf32>
    %65 = tpu.matmul %62, %64, %cst_60 {dimension_numbers = #tpu.dot_dimension_numbers<[1], [0], [0], [1], [0, 0, 1, 1], [], []>} : vector<16x128xbf16>, vector<128x128xbf16>, vector<16x128xf32> -> vector<16x128xf32>
    %66 = arith.addf %60, %65 : vector<16x128xf32>
    %c0_61 = arith.constant 0 : index
    %c10 = arith.constant 10 : index
    %c0_62 = arith.constant 0 : index
    %67 = vector.load %arg1[%c0_61, %c10, %c0_62] : memref<1x26x128xbf16, #tpu.memory_space<vmem>>, vector<1x16x128xbf16>
    %68 = vector.shape_cast %67 : vector<1x16x128xbf16> to vector<16x128xbf16>
    %c2_63 = arith.constant 2 : index
    %c1_64 = arith.constant 1 : index
    %c0_65 = arith.constant 0 : index
    %c0_66 = arith.constant 0 : index
    %69 = vector.load %arg3[%c2_63, %c1_64, %c0_65, %c0_66] : memref<3x2x128x128xbf16, #tpu.memory_space<vmem>>, vector<1x1x128x128xbf16>
    %70 = vector.shape_cast %69 : vector<1x1x128x128xbf16> to vector<128x128xbf16>
    %cst_67 = arith.constant dense<0.000000e+00> : vector<16x128xf32>
    %71 = tpu.matmul %68, %70, %cst_67 {dimension_numbers = #tpu.dot_dimension_numbers<[1], [0], [0], [1], [0, 0, 1, 1], [], []>} : vector<16x128xbf16>, vector<128x128xbf16>, vector<16x128xf32> -> vector<16x128xf32>
    %72 = arith.addf %66, %71 : vector<16x128xf32>
    %73 = arith.truncf %72 : vector<16x128xf32> to vector<16x128xbf16>
    %c0_68 = arith.constant 0 : index
    %c2_69 = arith.constant 2 : index
    %c0_70 = arith.constant 0 : index
    %c0_71 = arith.constant 0 : index
    %74 = vector.load %arg4[%c0_68, %c2_69, %c0_70, %c0_71] : memref<1x3x16x128xbf16, #tpu.memory_space<vmem>>, vector<1x1x16x128xbf16>
    %75 = vector.shape_cast %74 : vector<1x1x16x128xbf16> to vector<16x128xbf16>
    %76 = vector.shape_cast %73 : vector<16x128xbf16> to vector<1x1x16x128xbf16>
    tpu.vector_store %arg4[%c0_68, %c2_69, %c0_70, %c0_71], %76 {strides = array<i32>} : memref<1x3x16x128xbf16, #tpu.memory_space<vmem>>, vector<1x1x16x128xbf16>,
    %cst_72 = arith.constant dense<0.000000e+00> : vector<128xf32>
    %77 = vector.multi_reduction <add>, %72, %cst_72 [0] : vector<16x128xf32> to vector<128xf32>
    %78 = vector.shape_cast %77 : vector<128xf32> to vector<1x128xf32>
    %c0_73 = arith.constant 0 : index
    %c4_74 = arith.constant 4 : index
    %c0_75 = arith.constant 0 : index
    %79 = vector.load %arg5[%c0_73, %c4_74, %c0_75] : memref<1x6x128xf32, #tpu.memory_space<vmem>>, vector<1x1x128xf32>
    %80 = vector.shape_cast %79 : vector<1x1x128xf32> to vector<1x128xf32>
    %81 = vector.shape_cast %78 : vector<1x128xf32> to vector<1x1x128xf32>
    tpu.vector_store %arg5[%c0_73, %c4_74, %c0_75], %81 {strides = array<i32>} : memref<1x6x128xf32, #tpu.memory_space<vmem>>, vector<1x1x128xf32>,
    %82 = arith.mulf %72, %72 : vector<16x128xf32>
    %cst_76 = arith.constant dense<0.000000e+00> : vector<128xf32>
    %83 = vector.multi_reduction <add>, %82, %cst_76 [0] : vector<16x128xf32> to vector<128xf32>
    %84 = vector.shape_cast %83 : vector<128xf32> to vector<1x128xf32>
    %c0_77 = arith.constant 0 : index
    %c5_78 = arith.constant 5 : index
    %c0_79 = arith.constant 0 : index
    %85 = vector.load %arg5[%c0_77, %c5_78, %c0_79] : memref<1x6x128xf32, #tpu.memory_space<vmem>>, vector<1x1x128xf32>
    %86 = vector.shape_cast %85 : vector<1x1x128xf32> to vector<1x128xf32>
    %87 = vector.shape_cast %84 : vector<1x128xf32> to vector<1x1x128xf32>
    tpu.vector_store %arg5[%c0_77, %c5_78, %c0_79], %87 {strides = array<i32>} : memref<1x6x128xf32, #tpu.memory_space<vmem>>, vector<1x1x128xf32>,
    return
  }
  func.func @transform_0(%arg0: i32) -> (i32, i32, i32) {
    %c0_i32 = arith.constant 0 : i32
    %c0_i32_0 = arith.constant 0 : i32
    %c0_i32_1 = arith.constant 0 : i32
    return %arg0, %c0_i32, %c0_i32_0 : i32, i32, i32
  }
  func.func @transform_1(%arg0: i32) -> (i32, i32) {
    %c0_i32 = arith.constant 0 : i32
    %c0_i32_0 = arith.constant 0 : i32
    %c0_i32_1 = arith.constant 0 : i32
    return %c0_i32, %c0_i32_0 : i32, i32
  }
  func.func @transform_2(%arg0: i32) -> (i32, i32, i32, i32) {
    %c0_i32 = arith.constant 0 : i32
    %c0_i32_0 = arith.constant 0 : i32
    %c0_i32_1 = arith.constant 0 : i32
    %c0_i32_2 = arith.constant 0 : i32
    %c0_i32_3 = arith.constant 0 : i32
    return %c0_i32, %c0_i32_0, %c0_i32_1, %c0_i32_2 : i32, i32, i32, i32
  }
  func.func @transform_3(%arg0: i32) -> (i32, i32, i32, i32) {
    %c0_i32 = arith.constant 0 : i32
    %c0_i32_0 = arith.constant 0 : i32
    %c0_i32_1 = arith.constant 0 : i32
    %c0_i32_2 = arith.constant 0 : i32
    return %arg0, %c0_i32, %c0_i32_0, %c0_i32_1 : i32, i32, i32, i32
  }
  func.func @transform_4(%arg0: i32) -> (i32, i32, i32) {
    %c0_i32 = arith.constant 0 : i32
    %c0_i32_0 = arith.constant 0 : i32
    %c0_i32_1 = arith.constant 0 : i32
    return %arg0, %c0_i32, %c0_i32_0 : i32, i32, i32
  }
}

module attributes {stable_mosaic.version = 11 : i64} {
  func.func @bn_relu_sum_kernel(%arg0: i32, %arg1: i32, %arg2: memref<1x3x16x128xbf16, #tpu.memory_space<vmem>>, %arg3: memref<3x1x128xf32, #tpu.memory_space<vmem>>, %arg4: memref<3x1x128xf32, #tpu.memory_space<vmem>>, %arg5: memref<1x16x128xf32, #tpu.memory_space<vmem>>) attributes {dimension_semantics = [#tpu.dimension_semantics<parallel>, #tpu.dimension_semantics<parallel>], iteration_bounds = array<i64: 2, 1>, scalar_prefetch = 0 : i64, scratch_operands = 0 : i64, tpu.core_type = #tpu.core_type<tc>, window_params = [{transform_indices = @transform_0, window_bounds = array<i64: 1, 3, 16, 128>}, {pipeline_mode = #tpu.pipeline_mode<synchronous>, transform_indices = @transform_1, window_bounds = array<i64: 3, 1, 128>}, {pipeline_mode = #tpu.pipeline_mode<synchronous>, transform_indices = @transform_2, window_bounds = array<i64: 3, 1, 128>}, {transform_indices = @transform_3, window_bounds = array<i64: 1, 16, 128>}]} {
    %c0 = arith.constant 0 : index
    %c0_0 = arith.constant 0 : index
    %c0_1 = arith.constant 0 : index
    %c0_2 = arith.constant 0 : index
    %0 = vector.load %arg2[%c0, %c0_0, %c0_1, %c0_2] : memref<1x3x16x128xbf16, #tpu.memory_space<vmem>>, vector<1x1x16x128xbf16>
    %1 = vector.shape_cast %0 : vector<1x1x16x128xbf16> to vector<16x128xbf16>
    %2 = arith.extf %1 : vector<16x128xbf16> to vector<16x128xf32>
    %c0_3 = arith.constant 0 : index
    %c0_4 = arith.constant 0 : index
    %c0_5 = arith.constant 0 : index
    %3 = vector.load %arg3[%c0_3, %c0_4, %c0_5] : memref<3x1x128xf32, #tpu.memory_space<vmem>>, vector<1x1x128xf32>
    %4 = vector.shape_cast %3 : vector<1x1x128xf32> to vector<1x128xf32>
    %5 = vector.broadcast %4 : vector<1x128xf32> to vector<16x128xf32>
    %6 = arith.mulf %2, %5 : vector<16x128xf32>
    %c0_6 = arith.constant 0 : index
    %c0_7 = arith.constant 0 : index
    %c0_8 = arith.constant 0 : index
    %7 = vector.load %arg4[%c0_6, %c0_7, %c0_8] : memref<3x1x128xf32, #tpu.memory_space<vmem>>, vector<1x1x128xf32>
    %8 = vector.shape_cast %7 : vector<1x1x128xf32> to vector<1x128xf32>
    %9 = vector.broadcast %8 : vector<1x128xf32> to vector<16x128xf32>
    %10 = arith.addf %6, %9 : vector<16x128xf32>
    %cst = arith.constant 0.000000e+00 : f32
    %11 = vector.broadcast %cst : f32 to vector<16x128xf32>
    %12 = arith.maximumf %10, %11 : vector<16x128xf32>
    %c0_9 = arith.constant 0 : index
    %c1 = arith.constant 1 : index
    %c0_10 = arith.constant 0 : index
    %c0_11 = arith.constant 0 : index
    %13 = vector.load %arg2[%c0_9, %c1, %c0_10, %c0_11] : memref<1x3x16x128xbf16, #tpu.memory_space<vmem>>, vector<1x1x16x128xbf16>
    %14 = vector.shape_cast %13 : vector<1x1x16x128xbf16> to vector<16x128xbf16>
    %15 = arith.extf %14 : vector<16x128xbf16> to vector<16x128xf32>
    %c1_12 = arith.constant 1 : index
    %c0_13 = arith.constant 0 : index
    %c0_14 = arith.constant 0 : index
    %16 = vector.load %arg3[%c1_12, %c0_13, %c0_14] : memref<3x1x128xf32, #tpu.memory_space<vmem>>, vector<1x1x128xf32>
    %17 = vector.shape_cast %16 : vector<1x1x128xf32> to vector<1x128xf32>
    %18 = vector.broadcast %17 : vector<1x128xf32> to vector<16x128xf32>
    %19 = arith.mulf %15, %18 : vector<16x128xf32>
    %c1_15 = arith.constant 1 : index
    %c0_16 = arith.constant 0 : index
    %c0_17 = arith.constant 0 : index
    %20 = vector.load %arg4[%c1_15, %c0_16, %c0_17] : memref<3x1x128xf32, #tpu.memory_space<vmem>>, vector<1x1x128xf32>
    %21 = vector.shape_cast %20 : vector<1x1x128xf32> to vector<1x128xf32>
    %22 = vector.broadcast %21 : vector<1x128xf32> to vector<16x128xf32>
    %23 = arith.addf %19, %22 : vector<16x128xf32>
    %cst_18 = arith.constant 0.000000e+00 : f32
    %24 = vector.broadcast %cst_18 : f32 to vector<16x128xf32>
    %25 = arith.maximumf %23, %24 : vector<16x128xf32>
    %26 = arith.addf %12, %25 : vector<16x128xf32>
    %c0_19 = arith.constant 0 : index
    %c2 = arith.constant 2 : index
    %c0_20 = arith.constant 0 : index
    %c0_21 = arith.constant 0 : index
    %27 = vector.load %arg2[%c0_19, %c2, %c0_20, %c0_21] : memref<1x3x16x128xbf16, #tpu.memory_space<vmem>>, vector<1x1x16x128xbf16>
    %28 = vector.shape_cast %27 : vector<1x1x16x128xbf16> to vector<16x128xbf16>
    %29 = arith.extf %28 : vector<16x128xbf16> to vector<16x128xf32>
    %c2_22 = arith.constant 2 : index
    %c0_23 = arith.constant 0 : index
    %c0_24 = arith.constant 0 : index
    %30 = vector.load %arg3[%c2_22, %c0_23, %c0_24] : memref<3x1x128xf32, #tpu.memory_space<vmem>>, vector<1x1x128xf32>
    %31 = vector.shape_cast %30 : vector<1x1x128xf32> to vector<1x128xf32>
    %32 = vector.broadcast %31 : vector<1x128xf32> to vector<16x128xf32>
    %33 = arith.mulf %29, %32 : vector<16x128xf32>
    %c2_25 = arith.constant 2 : index
    %c0_26 = arith.constant 0 : index
    %c0_27 = arith.constant 0 : index
    %34 = vector.load %arg4[%c2_25, %c0_26, %c0_27] : memref<3x1x128xf32, #tpu.memory_space<vmem>>, vector<1x1x128xf32>
    %35 = vector.shape_cast %34 : vector<1x1x128xf32> to vector<1x128xf32>
    %36 = vector.broadcast %35 : vector<1x128xf32> to vector<16x128xf32>
    %37 = arith.addf %33, %36 : vector<16x128xf32>
    %cst_28 = arith.constant 0.000000e+00 : f32
    %38 = vector.broadcast %cst_28 : f32 to vector<16x128xf32>
    %39 = arith.maximumf %37, %38 : vector<16x128xf32>
    %40 = arith.addf %26, %39 : vector<16x128xf32>
    %cst_29 = arith.constant 0.000000e+00 : f32
    %41 = vector.broadcast %cst_29 : f32 to vector<16x128xf32>
    %42 = arith.maximumf %40, %41 : vector<16x128xf32>
    %c0_30 = arith.constant 0 : index
    %c0_31 = arith.constant 0 : index
    %c0_32 = arith.constant 0 : index
    %43 = vector.load %arg5[%c0_30, %c0_31, %c0_32] : memref<1x16x128xf32, #tpu.memory_space<vmem>>, vector<1x16x128xf32>
    %44 = vector.shape_cast %43 : vector<1x16x128xf32> to vector<16x128xf32>
    %45 = vector.shape_cast %42 : vector<16x128xf32> to vector<1x16x128xf32>
    tpu.vector_store %arg5[%c0_30, %c0_31, %c0_32], %45 {strides = array<i32>} : memref<1x16x128xf32, #tpu.memory_space<vmem>>, vector<1x16x128xf32>,
    return
  }
  func.func @transform_0(%arg0: i32, %arg1: i32) -> (i32, i32, i32, i32) {
    %c0_i32 = arith.constant 0 : i32
    %c0_i32_0 = arith.constant 0 : i32
    %c0_i32_1 = arith.constant 0 : i32
    return %arg0, %c0_i32, %arg1, %c0_i32_0 : i32, i32, i32, i32
  }
  func.func @transform_1(%arg0: i32, %arg1: i32) -> (i32, i32, i32) {
    %c0_i32 = arith.constant 0 : i32
    %c0_i32_0 = arith.constant 0 : i32
    %c0_i32_1 = arith.constant 0 : i32
    %c0_i32_2 = arith.constant 0 : i32
    return %c0_i32, %c0_i32_0, %c0_i32_1 : i32, i32, i32
  }
  func.func @transform_2(%arg0: i32, %arg1: i32) -> (i32, i32, i32) {
    %c0_i32 = arith.constant 0 : i32
    %c0_i32_0 = arith.constant 0 : i32
    %c0_i32_1 = arith.constant 0 : i32
    %c0_i32_2 = arith.constant 0 : i32
    return %c0_i32, %c0_i32_0, %c0_i32_1 : i32, i32, i32
  }
  func.func @transform_3(%arg0: i32, %arg1: i32) -> (i32, i32, i32) {
    %c0_i32 = arith.constant 0 : i32
    %c0_i32_0 = arith.constant 0 : i32
    return %arg0, %arg1, %c0_i32 : i32, i32, i32
  }
}

</mosaic_0001>

<bundles_post_ra>
// kernel: dilation_conv_forward.3
= control target key start
LH: loop header
LB: loop body
LE: loop exit
PB: predicated region body
PF: predicated region fallthrough
CT: control target
= control target key end

     0   :  { %s491_s12 = smov 0   ;;  %s493_s13 = smov 0   ;;  %s546_s0 = inlined_call_operand.vmem [shape: bf16[2,3,16,128], index: 0, kind: input, shape index: {}]   ;;  %s547_s1 = inlined_call_operand.vmem [shape: f32[3,1,128], index: 1, kind: input, shape index: {}]   ;;  %s548_s2 = inlined_call_operand.vmem [shape: f32[3,1,128], index: 2, kind: input, shape index: {}]   ;;  %s549_s3 = inlined_call_operand.vmem [shape: f32[2,16,128], index: 3, kind: output, shape index: {}]  }
   0x1   :  { %s495_s14 = smov 0  }
   0x2 LB: > { %s25_s15 = sadd.s32 1, %s465_s13  ;;  %p387_p0 = scmp.ge.s32.totalorder %s469_s14, 1  ;;  %s469_s14 = sphi %s495_s14, %s13_s14   ;;  %s465_s13 = sphi %s493_s13, %s551_s13   ;;  %s461_s12 = sphi %s491_s12, %s550_s12  }
   0x3   : > { %p27_p1 = scmp.ge.s32.totalorder %s25_s15, 2  ;;  %p158_p2 = scmp.lt.s32.totalorder %s469_s14, 3 }
   0x5   : > { %s553_s15 = smov (%p27_p1, %s25_s15), 0  ;;  %p159_p3 = pnand %p387_p0, %p158_p2 }
   0x6   : > { %p191_p4 = scmp.lt.s32.totalorder (!%p159_p3), %s461_s12, 1  ;;  %v391_v0 = vld [vmem:[%s547_s1] ss:$0 sm:$0xff] (!%p159_p3)  ;;  %v396_v1 = vld [vmem:[%s547_s1 + $0x1] ss:$0 sm:$0xff] (!%p159_p3) }
   0x7   : > { %162 = sbr.rel (%p159_p3) target bundleno = 34 (0x22), region = 32  ;;  %v402_v9 = vld [vmem:[%s547_s1 + $0x2] ss:$0 sm:$0xff] (!%p159_p3)  ;;  %v392_v10 = vld [vmem:[%s548_s2] ss:$0 sm:$0xff] (!%p159_p3) }
   0x8   : > { %v398_v11 = vld [vmem:[%s548_s2 + $0x1] ss:$0 sm:$0xff] (!%p159_p3)  ;;  %v404_v16 = vld [vmem:[%s548_s2 + $0x2] ss:$0 sm:$0xff] (!%p159_p3) }
   0xe   : > { %s555_s12 = smov (!%p191_p4, %s461_s12), 1 }
   0xf   : > { %s422_s16 = smul.u32 24, %s555_s12  ;;  %s407_s5 = sshll.u32 %s555_s12, 4 }
  0x10   : > { %s208_s8 = scalar_lea.vmem %s549_s3, %s407_s5 }
  0x11   : > { %s198_s19 = scalar_lea.vmem %s546_s0, %s422_s16 }
  0x12   : > { %v409_v2 = vld [vmem:[%s198_s19] sm:$0xff]   ;;  %v420_v3 = vld [vmem:[%s198_s19 + $0x8] sm:$0xff]   ;;  %v421_v4 = vld [vmem:[%s198_s19 + $0x10] sm:$0xff]  }
  0x13   : > { %v410_v5 = vunpack.c.l.bf16 %v409_v2  ;;  %v411_v6 = vunpack.c.h.bf16 %v409_v2  ;;  %v414_v7 = vunpack.c.l.bf16 %v420_v3  ;;  %v415_v8 = vunpack.c.h.bf16 %v420_v3 }
  0x14   : > { %v418_v12 = vunpack.c.l.bf16 %v421_v4  ;;  %v419_v13 = vunpack.c.h.bf16 %v421_v4 }
  0x15   : > { %v221_v14 = vmul.f32 %v410_v5, %v391_v0  ;;  %v247_v15 = vmul.f32 %v414_v7, %v396_v1  ;;  %v222_v17 = vmul.f32 %v411_v6, %v391_v0  ;;  %v248_v18 = vmul.f32 %v415_v8, %v396_v1 }
  0x16   : > { %v276_v19 = vmul.f32 %v418_v12, %v402_v9  ;;  %v277_v20 = vmul.f32 %v419_v13, %v402_v9 }
  0x17   : > { %v230_v21 = vadd.f32 %v392_v10, %v221_v14  ;;  %v257_v22 = vadd.f32 %v398_v11, %v247_v15  ;;  %v231_v23 = vadd.f32 %v392_v10, %v222_v17  ;;  %v258_v24 = vadd.f32 %v398_v11, %v248_v18 }
  0x18   : > { %v286_v25 = vadd.f32 %v404_v16, %v276_v19  ;;  %v287_v26 = vadd.f32 %v404_v16, %v277_v20 }
  0x19   : > { %v232_v27 = vmax.f32 %v230_v21, 0.0  ;;  %v259_v28 = vmax.f32 %v257_v22, 0.0  ;;  %v233_v29 = vmax.f32 %v231_v23, 0.0  ;;  %v260_v30 = vmax.f32 %v258_v24, 0.0 }
  0x1a   : > { %v288_v31 = vmax.f32 %v286_v25, 0.0  ;;  %v289_v32 = vmax.f32 %v287_v26, 0.0 }
  0x1b   : > { %v261_v33 = vadd.f32 %v259_v28, %v232_v27  ;;  %v262_v34 = vadd.f32 %v260_v30, %v233_v29 }
  0x1d   : > { %v290_v35 = vadd.f32 %v288_v31, %v261_v33  ;;  %v291_v36 = vadd.f32 %v289_v32, %v262_v34 }
  0x1f   : > { %v292_v37 = vmax.f32 %v290_v35, 0.0  ;;  %v293_v38 = vmax.f32 %v291_v36, 0.0 }
  0x21   : > { %294 = vst [vmem:[%s208_s8] sm:$0xff] %v292_v37  ;;  %295 = vst [vmem:[%s208_s8 + $0x8] sm:$0xff] %v293_v38 }
  0x22 PF: > { %s13_s14 = sadd.s32 1, %s469_s14   ;;  %s550_s12 = smov %s465_s13 }
  0x23   : > { %p10_p5 = scmp.ge.s32.totalorder %s13_s14, 4   ;;  %s551_s13 = smov %s553_s15 }
  0x25   :  { %12 = sbr.rel (!%p10_p5) target bundleno = 2 (0x2), region = 68 }

// kernel: dilation_conv_forward.2
= control target key start
LH: loop header
LB: loop body
LE: loop exit
PB: predicated region body
PF: predicated region fallthrough
CT: control target
= control target key end

     0   :  { %s1919_s15 = smov 0   ;;  %s2273_s0 = inlined_call_operand.vmem [shape: bf16[2,26,128], index: 0, kind: input, shape index: {}]   ;;  %s2274_s1 = inlined_call_operand.vmem [shape: bf16[128,384], index: 1, kind: input, shape index: {}]   ;;  %s2275_s2 = inlined_call_operand.vmem [shape: bf16[3,2,128,128], index: 2, kind: input, shape index: {}]   ;;  %s2276_s3 = inlined_call_operand.vmem [shape: bf16[2,3,16,128], index: 3, kind: output, shape index: {0}]   ;;  %s2277_s4 = inlined_call_operand.vmem [shape: f32[2,6,128], index: 4, kind: output, shape index: {1}]  }
   0x1 LB: > { %s1365_s16 = sadd.s32 4294967295, %s1889_s15   ;;  %p1369_p0 = scmp.ge.s32.totalorder %s1889_s15, 1  ;;  %s1889_s15 = sphi %s1919_s15, %s15_s15  }
   0x2   : > { %p165_p1 = scmp.lt.s32.totalorder %s1889_s15, 3 }
   0x4   : > { %p166_p2 = pnand %p1369_p0, %p165_p1 }
   0x5   : > { %v1793_v0 = vld [vmem:[%s2274_s1 + $0x4] ss:$12 sps:$4 sm:$0xff] (!%p166_p2)   ;;  %v1891_v1 = vmov (!%p166_p2), 0.0   ;;  %v1892_v3 = vmov (!%p166_p2), 0   ;;  %v1796_v4 = vld [vmem:[%s2274_s1] ss:$12 sps:$4 sm:$0xff] (!%p166_p2)  }
   0x6   : > { %169 = sbr.rel (%p166_p2) target bundleno = 371 (0x173), region = 32  ;;  %1675 = vmatprep.subr.bf16.mxu1 (!%p166_p2), %v1891_v1  ;;  %v1795_v2 = vld [vmem:[%s2275_s2 + $0x40] sm:$0xff] (!%p166_p2)   ;;  %432 = vmatprep.mubr.bf16.mxu0 (!%p166_p2), %v1892_v3  ;;  %vm1893_vm0 = vmmov (!%p166_p2), 0   ;;  %p195_p3 = scmp.lt.s32.totalorder (!%p166_p2), %s1365_s16, 1  ;;  %v1797_v5 = vld [vmem:[%s2274_s1 + $0x1c] ss:$12 sps:$4 sm:$0xff] (!%p166_p2)  }
   0x7   : > { %400 = vmatprep.subr.bf16.mxu0 (!%p166_p2), %v1793_v0  ;;  %1691 = vmatprep.mubr.msk.bf16.mxu1 (!%p166_p2), %vm1893_vm0, %v1891_v1  ;;  %v1799_v6 = vld [vmem:[%s2275_s2 + $0x48] sm:$0xff] (!%p166_p2)   ;;  %v1800_v7 = vld [vmem:[%s2274_s1 + $0x18] ss:$12 sps:$4 sm:$0xff] (!%p166_p2)   ;;  %v1801_v8 = vld [vmem:[%s2274_s1 + $0x34] ss:$12 sps:$4 sm:$0xff] (!%p166_p2)   ;;  %vm621_vm1 = vcmask (!%p166_p2), 1044480  }
   0x8   : > { %1676 = vmatpush3.bf16.msra.mxu1 (!%p166_p2), %v1795_v2  ;;  %401 = vmatpush1.bf16.msra.mxu0 (!%p166_p2), %v1796_v4  ;;  %v1803_v9 = vld [vmem:[%s2275_s2 + $0x50] sm:$0xff] (!%p166_p2)   ;;  %v1805_v11 = vld [vmem:[%s2274_s1 + $0x4c] ss:$12 sps:$4 sm:$0xff] (!%p166_p2)   ;;  %v1811_v15 = vld [vmem:[%s2275_s2 + $0x60] sm:$0xff] (!%p166_p2)   ;;  %vm253_vm2 = vsmask.f32 (!%p166_p2), 5376 }
   0x9   : > { %1677 = vmatprep.subr.bf16.mxu1 (!%p166_p2), %v1891_v1  ;;  %402 = vmatprep.subr.bf16.mxu0 (!%p166_p2), %v1797_v5  ;;  %v1804_v10 = vld [vmem:[%s2274_s1 + $0x30] ss:$12 sps:$4 sm:$0xff] (!%p166_p2)   ;;  %v1808_v13 = vld [vmem:[%s2274_s1 + $0x48] ss:$12 sps:$4 sm:$0xff] (!%p166_p2)   ;;  %v1812_v16 = vld [vmem:[%s2274_s1 + $0x60] ss:$12 sps:$4 sm:$0xff] (!%p166_p2)  }
   0xa   : > { %v1807_v12 = vld [vmem:[%s2275_s2 + $0x58] sm:$0xff] (!%p166_p2)   ;;  %v1809_v14 = vld [vmem:[%s2274_s1 + $0x64] ss:$12 sps:$4 sm:$0xff] (!%p166_p2)   ;;  %v1815_v18 = vld [vmem:[%s2275_s2 + $0x68] sm:$0xff] (!%p166_p2)   ;;  %vm504_vm3 = vcmask (!%p166_p2), 1045504   ;;  %vm773_vm4 = vcmask (!%p166_p2), 1046528  }
   0xb   : > { %v1813_v17 = vld [vmem:[%s2274_s1 + $0x7c] ss:$12 sps:$4 sm:$0xff] (!%p166_p2)   ;;  %v1816_v19 = vld [vmem:[%s2274_s1 + $0x78] ss:$12 sps:$4 sm:$0xff] (!%p166_p2)   ;;  %v1817_v21 = vld [vmem:[%s2274_s1 + $0x94] ss:$12 sps:$4 sm:$0xff] (!%p166_p2)  }
   0xc   : > { %1678 = vmatpush3.bf16.msra.mxu1 (!%p166_p2), %v1799_v6  ;;  %403 = vmatpush1.bf16.msra.mxu0 (!%p166_p2), %v1800_v7  ;;  %v1819_v26 = vld [vmem:[%s2275_s2 + $0x70] sm:$0xff] (!%p166_p2)   ;;  %v1821_v33 = vld [vmem:[%s2274_s1 + $0xac] ss:$12 sps:$4 sm:$0xff] (!%p166_p2)   ;;  %v1828_v45 = vld [vmem:[%s2275_s2 + $0xc0] sm:$0xff] (!%p166_p2)  }
   0xd   : > { %s2279_s16 = smov (!%p195_p3, %s1365_s16), 1  ;;  %1679 = vmatprep.subr.bf16.mxu1 %v1891_v1  ;;  %404 = vmatprep.subr.bf16.mxu0 %v1801_v8  ;;  %v1820_v31 = vld [vmem:[%s2274_s1 + $0x90] ss:$12 sps:$4 sm:$0xff]   ;;  %v1824_v41 = vld [vmem:[%s2274_s1 + $0xa8] ss:$12 sps:$4 sm:$0xff]   ;;  %v1836_v54 = vld [vmem:[%s2275_s2 + $0xe0] sm:$0xff]  }
   0xe   : > { %s1548_s17 = sshll.u32 %s2279_s16, 4  ;;  %v1823_v38 = vld [vmem:[%s2275_s2 + $0x78] sm:$0xff]   ;;  %v1829_v47 = vld [vmem:[%s2274_s1 + $0x8] ss:$12 sps:$4 sm:$0xff]   ;;  %v1831_v49 = vld [vmem:[%s2274_s1 + $0x20] ss:$12 sps:$4 sm:$0xff]  }
   0xf   : > { %s1981_s24 = scalar_lea.vmem %s2273_s0, %s1548_s17  ;;  %v1830_v48 = vld [vmem:[%s2275_s2 + $0xc8] sm:$0xff]   ;;  %v1832_v50 = vld [vmem:[%s2275_s2 + $0xd0] sm:$0xff]   ;;  %v1833_v51 = vld [vmem:[%s2274_s1 + $0x38] ss:$12 sps:$4 sm:$0xff]   ;;  %s1373_s29 = sshll.u32 %s2279_s16, 3 }
  0x10   : > { %1680 = vmatpush3.bf16.msra.mxu1 %v1803_v9  ;;  %405 = vmatpush1.bf16.msra.mxu0 %v1804_v10  ;;  %v210_v20 = vld [vmem:[%s1981_s24] sm:$0xc]  ;;  %v211_v22 = vld [vmem:[%s1981_s24 + $0x4] sm:$0xf]  ;;  %v1834_v52 = vld [vmem:[%s2275_s2 + $0xd8] sm:$0xff]   ;;  %s2260_s6 = scalar_lea.vmem %s2277_s4, %s1373_s29 }
  0x11   : > { %1681 = vmatprep.subr.bf16.mxu1 %v1891_v1  ;;  %406 = vmatprep.subr.bf16.mxu0 %v1805_v11  ;;  %v600_v23 = vld [vmem:[%s1981_s24] sm:$0x8]  ;;  %v2003_v24 = vcombine.low %v210_v20, %v211_v22  ;;  %v1826_v25 = vld [vmem:[%s1981_s24 + $0x8] ss:$0 sps:$4 sm:$0x77]   ;;  %v1840_v59 = vld [vmem:[%s2275_s2 + $0xf0] sm:$0xff]  }
  0x12   : > { %v263_v29 = vshrl.u32 %v1826_v25, 16  ;;  %v266_v30 = vshll.u32 %v1826_v25, 16  ;;  %v1425_v32 = vcombine.low %v600_v23, %v211_v22  ;;  %v623_v40 = vrot.slane %v1826_v25, 3  ;;  %v1835_v53 = vld [vmem:[%s2274_s1 + $0x50] ss:$12 sps:$4 sm:$0xff]   ;;  %v1838_v56 = vld [vmem:[%s2275_s2 + $0xe8] sm:$0xff]  }
  0x13   : > { %v255_v27 = vshrl.u32 %v2003_v24, 16  ;;  %v258_v28 = vshll.u32 %v2003_v24, 16  ;;  %v1837_v55 = vld [vmem:[%s2274_s1 + $0x68] ss:$12 sps:$4 sm:$0xff]   ;;  %v1839_v57 = vld [vmem:[%s2274_s1 + $0x80] ss:$12 sps:$4 sm:$0xff]  }
  0x14   : > { %1682 = vmatpush3.bf16.msra.mxu1 %v1807_v12  ;;  %407 = vmatpush1.bf16.msra.mxu0 %v1808_v13  ;;  %v265_v36 = vrot.slane %v263_v29, 2  ;;  %v268_v37 = vrot.slane %v266_v30, 3  ;;  %v622_v39 = vrot.slane %v1425_v32, 3  ;;  %v505_v58 = vrot.slane %v2003_v24, 2  ;;  %v1841_v61 = vld [vmem:[%s2274_s1 + $0x98] ss:$12 sps:$4 sm:$0xff]  }
  0x15   : > { %1683 = vmatprep.subr.bf16.mxu1 %v1891_v1  ;;  %408 = vmatprep.subr.bf16.mxu0 %v1809_v14  ;;  %v257_v34 = vrot.slane %v255_v27, 2  ;;  %v260_v35 = vrot.slane %v258_v28, 3  ;;  %v1861_v60 = vld [vmem:[%s1981_s24 + $0x8] ss:$0 sps:$4 sm:$0x33]   ;;  %v1842_v63 = vld [vmem:[%s2275_s2 + $0xf8] sm:$0xff]  }
  0x16   : > { %v269_v43 = vor.u32 %v268_v37, %v265_v36  ;;  %v624_v44 = vsel %vm621_vm1, %v622_v39, %v623_v40  ;;  %v506_v62 = vrot.slane %v1861_v60, 2  ;;  %v2094_v0 = vld [vmem:[%s1981_s24 + $0x4] sm:$0xf]  ;;  %v869_v3 = vld [vmem:[%s1981_s24 + $0x8] sm:$0xf]  ;;  %v1849_v10 = vld [vmem:[%s2275_s2 + $0x110] sm:$0xff]  }
  0x17   : > { %v261_v42 = vor.u32 %v260_v35, %v257_v34  ;;  %v1843_v4 = vld [vmem:[%s2274_s1 + $0xb0] ss:$12 sps:$4 sm:$0xff]   ;;  %v1478_v5 = vcombine.low %v2094_v0, %v869_v3  ;;  %v1845_v6 = vld [vmem:[%s2275_s2 + $0x100] sm:$0xff]   ;;  %v1847_v8 = vld [vmem:[%s2275_s2 + $0x108] sm:$0xff]  }
  0x18   : > { %1684 = vmatpush3.bf16.msra.mxu1 %v1811_v15  ;;  %409 = vmatpush1.bf16.msra.mxu0 %v1812_v16  ;;  %v2096_v2 = vsel %vm504_vm3, %v505_v58, %v506_v62  ;;  %v1846_v7 = vld [vmem:[%s2275_s2] sm:$0xff]   ;;  %v1848_v9 = vld [vmem:[%s2275_s2 + $0x8] sm:$0xff]   ;;  %v1850_v11 = vld [vmem:[%s2275_s2 + $0x10] sm:$0xff]  }
  0x19   : > { %1685 = vmatprep.subr.bf16.mxu1 %v1891_v1  ;;  %410 = vmatprep.subr.bf16.mxu0 %v1813_v17  ;;  %v2029_v46 = vsel %vm253_vm2, %v261_v42, %v269_v43  ;;  %v1851_v12 = vld [vmem:[%s2275_s2 + $0x118] sm:$0xff]   ;;  %v1853_v14 = vld [vmem:[%s2275_s2 + $0x120] sm:$0xff]   ;;  %v1855_v16 = vld [vmem:[%s2275_s2 + $0x128] sm:$0xff]  }
  0x1a   : > { %v1852_v13 = vld [vmem:[%s2275_s2 + $0x18] sm:$0xff]   ;;  %v1854_v15 = vld [vmem:[%s2275_s2 + $0x20] sm:$0xff]   ;;  %v1856_v17 = vld [vmem:[%s2275_s2 + $0x28] sm:$0xff]  }
  0x1b   : > { %v1859_v20 = vld [vmem:[%s2275_s2 + $0x138] sm:$0xff]   ;;  %v1862_v22 = vld [vmem:[%s1981_s24] sm:$0xff]   ;;  %v1865_v25 = vld [vmem:[%s2275_s2 + $0x148] sm:$0xff]  }
  0x1c   : > { %1686 = vmatpush3.bf16.msra.mxu1 %v1815_v18  ;;  %411 = vmatpush1.bf16.msra.mxu0 %v1816_v19  ;;  %v1857_v18 = vld [vmem:[%s2275_s2 + $0x130] sm:$0xff]   ;;  %v1863_v23 = vld [vmem:[%s2275_s2 + $0x140] sm:$0xff]   ;;  %v1869_v29 = vld [vmem:[%s2275_s2 + $0x158] sm:$0xff]  }
  0x1d   : > { %1687 = vmatprep.subr.bf16.mxu1 %v1891_v1  ;;  %412 = vmatprep.subr.bf16.mxu0 %v1817_v21  ;;  %v1858_v19 = vld [vmem:[%s2275_s2 + $0x30] sm:$0xff]   ;;  %v1860_v21 = vld [vmem:[%s2275_s2 + $0x38] sm:$0xff]   ;;  %v1864_v24 = vld [vmem:[%s2275_s2 + $0x80] sm:$0xff]  }
  0x1e   : > { %v1867_v27 = vld [vmem:[%s2275_s2 + $0x150] sm:$0xff]   ;;  %v1870_v30 = vld [vmem:[%s2275_s2 + $0x98] sm:$0xff]   ;;  %v1872_v32 = vld [vmem:[%s2275_s2 + $0xa0] sm:$0xff]  }
  0x1f   : > { %v1868_v28 = vld [vmem:[%s2275_s2 + $0x90] sm:$0xff]   ;;  %v1874_v34 = vld [vmem:[%s2275_s2 + $0xa8] sm:$0xff]   ;;  %v745_v35 = vld [vmem:[%s1981_s24] sm:$0xe] }
  0x20   : > { %1688 = vmatpush3.bf16.msra.mxu1 %v1819_v26  ;;  %413 = vmatpush1.bf16.msra.mxu0 %v1820_v31  ;;  %v1866_v26 = vld [vmem:[%s2275_s2 + $0x88] sm:$0xff]   ;;  %v1871_v31 = vld [vmem:[%s2275_s2 + $0x160] sm:$0xff]   ;;  %v1875_v36 = vld [vmem:[%s2275_s2 + $0x170] sm:$0xff]   ;;  %v1452_v40 = vcombine.low %v745_v35, %v2094_v0 }
  0x21   : > { %1689 = vmatprep.subr.bf16.mxu1 %v1891_v1  ;;  %414 = vmatprep.subr.bf16.mxu0 %v1821_v33  ;;  %v1873_v33 = vld [vmem:[%s2275_s2 + $0x168] sm:$0xff]   ;;  %v1876_v39 = vld [vmem:[%s2275_s2 + $0xb0] sm:$0xff]   ;;  %v1877_v42 = vld [vmem:[%s2275_s2 + $0x178] sm:$0xff]  }
  0x22   : > { %v1879_v37 = vld [vmem:[%s1981_s24 + $0x4] sm:$0xfe]  }
  0x23   : > { %v1155_v43 = vrot.slane %v1879_v37, 1 }
  0x24   : > { %1690 = vmatpush3.bf16.msra.mxu1 %v1823_v38  ;;  %415 = vmatpush1.bf16.msra.mxu0 %v1824_v41  ;;  %v1880_v38 = vld [vmem:[%s1981_s24 + $0xc] ss:$0 sps:$4 sm:$0x11]   ;;  %v1882_v41 = vld [vmem:[%s1981_s24 + $0x8] ss:$0 sps:$4 sm:$0x11]  }
  0x25   : > { %1715 = vmatprep.subr.bf16.mxu1 %v1891_v1  ;;  %1635 = vmatprep.subr.bf16.mxu0 %v1891_v1  ;;  %s1781_s24 = smul.u32 24, %s2279_s16 }
  0x27   : > { %1692 = vmatmul.mubr.bf16.vlgmr.msra.gmra.mrb[0].mxu1 %v624_v44  ;;  %433 = vmatmul.mubr.bf16.vlgmr.msra.gmra.mrb[0].mxu0 %v2029_v46  ;;  %v1156_v44 = vrot.slane %v1880_v38, 1  ;;  %s2253_s28 = scalar_lea.vmem %s2276_s3, %s1781_s24 }
  0x28   : > { %1716 = vmatpush3.bf16.msra.mxu1 %v1828_v45  ;;  %1636 = vmatpush3.bf16.msra.mxu0 %v1829_v47  ;;  %v1878_v45 = vld [vmem:[%s2275_s2 + $0xb8] sm:$0xff]   ;;  %v775_v47 = vrot.slane %v1882_v41, 1 }
  0x29   : > { %1717 = vmatprep.subr.bf16.mxu1 %v1891_v1  ;;  %1637 = vmatprep.subr.bf16.mxu0 %v1891_v1 }
  0x2a   : > { %1651 = vmatprep.mubr.msk.bf16.mxu0 %vm1893_vm0, %v1891_v1  ;;  %1731 = vmatprep.mubr.msk.bf16.mxu1 %vm1893_vm0, %v1891_v1 }
  0x2c   : > { %1718 = vmatpush3.bf16.msra.mxu1 %v1830_v48  ;;  %1638 = vmatpush3.bf16.msra.mxu0 %v1831_v49  ;;  %v1157_v48 = vsel %vm773_vm4, %v1155_v43, %v1156_v44 }
  0x2d   : > { %1719 = vmatprep.subr.bf16.mxu1 %v1891_v1  ;;  %1639 = vmatprep.subr.bf16.mxu0 %v1891_v1 }
  0x30   : > { %1720 = vmatpush3.bf16.msra.mxu1 %v1832_v50  ;;  %1640 = vmatpush3.bf16.msra.mxu0 %v1833_v51 }
  0x31   : > { %1721 = vmatprep.subr.bf16.mxu1 %v1891_v1  ;;  %1641 = vmatprep.subr.bf16.mxu0 %v1891_v1 }
  0x34   : > { %1722 = vmatpush3.bf16.msra.mxu1 %v1834_v52  ;;  %1642 = vmatpush3.bf16.msra.mxu0 %v1835_v53 }
  0x35   : > { %1723 = vmatprep.subr.bf16.mxu1 %v1891_v1  ;;  %1643 = vmatprep.subr.bf16.mxu0 %v1891_v1 }
  0x38   : > { %1724 = vmatpush3.bf16.msra.mxu1 %v1836_v54  ;;  %1644 = vmatpush3.bf16.msra.mxu0 %v1837_v55 }
  0x39   : > { %1725 = vmatprep.subr.bf16.mxu1 %v1891_v1  ;;  %1645 = vmatprep.subr.bf16.mxu0 %v1891_v1 }
  0x3c   : > { %1726 = vmatpush3.bf16.msra.mxu1 %v1838_v56  ;;  %1646 = vmatpush3.bf16.msra.mxu0 %v1839_v57 }
  0x3d   : > { %1727 = vmatprep.subr.bf16.mxu1 %v1891_v1  ;;  %1647 = vmatprep.subr.bf16.mxu0 %v1891_v1 }
  0x40   : > { %1728 = vmatpush3.bf16.msra.mxu1 %v1840_v59  ;;  %1648 = vmatpush3.bf16.msra.mxu0 %v1841_v61 }
  0x41   : > { %1729 = vmatprep.subr.bf16.mxu1 %v1891_v1  ;;  %1649 = vmatprep.subr.bf16.mxu0 %v1891_v1 }
  0x44   : > { %1730 = vmatpush3.bf16.msra.mxu1 %v1842_v63  ;;  %1650 = vmatpush3.bf16.msra.mxu0 %v1843_v4 }
  0x45   : > { %1735 = vmatprep.subr.bf16.mxu1 %v1891_v1  ;;  %1655 = vmatprep.subr.bf16.mxu0 %v1891_v1 }
  0x47   : > { %1732 = vmatmul.mubr.bf16.vlgmr.msra.gmra.mrb[4].mxu1 %v1478_v5  ;;  %1652 = vmatmul.mubr.bf16.vlgmr.msra.gmra.mrb[4].mxu0 %v2029_v46  ;;  %v774_v46 = vrot.slane %v1452_v40, 1 }
  0x48   : > { %1736 = vmatpush3.bf16.msra.mxu1 %v1845_v6  ;;  %1656 = vmatpush3.bf16.msra.mxu0 %v1846_v7 }
  0x49   : > { %1737 = vmatprep.subr.bf16.mxu1 %v1891_v1  ;;  %1657 = vmatprep.subr.bf16.mxu0 %v1891_v1  ;;  %v776_v49 = vsel %vm773_vm4, %v774_v46, %v775_v47 }
  0x4a   : > { %1671 = vmatprep.mubr.msk.bf16.mxu0 %vm1893_vm0, %v1891_v1  ;;  %1751 = vmatprep.mubr.msk.bf16.mxu1 %vm1893_vm0, %v1891_v1 }
  0x4c   : > { %1738 = vmatpush3.bf16.msra.mxu1 %v1847_v8  ;;  %1658 = vmatpush3.bf16.msra.mxu0 %v1848_v9 }
  0x4d   : > { %1739 = vmatprep.subr.bf16.mxu1 %v1891_v1  ;;  %1659 = vmatprep.subr.bf16.mxu0 %v1891_v1 }
  0x50   : > { %1740 = vmatpush3.bf16.msra.mxu1 %v1849_v10  ;;  %1660 = vmatpush3.bf16.msra.mxu0 %v1850_v11 }
  0x51   : > { %1741 = vmatprep.subr.bf16.mxu1 %v1891_v1  ;;  %1661 = vmatprep.subr.bf16.mxu0 %v1891_v1 }
  0x54   : > { %1742 = vmatpush3.bf16.msra.mxu1 %v1851_v12  ;;  %1662 = vmatpush3.bf16.msra.mxu0 %v1852_v13 }
  0x55   : > { %1743 = vmatprep.subr.bf16.mxu1 %v1891_v1  ;;  %1663 = vmatprep.subr.bf16.mxu0 %v1891_v1 }
  0x58   : > { %1744 = vmatpush3.bf16.msra.mxu1 %v1853_v14  ;;  %1664 = vmatpush3.bf16.msra.mxu0 %v1854_v15 }
  0x59   : > { %1745 = vmatprep.subr.bf16.mxu1 %v1891_v1  ;;  %1665 = vmatprep.subr.bf16.mxu0 %v1891_v1 }
  0x5c   : > { %1746 = vmatpush3.bf16.msra.mxu1 %v1855_v16  ;;  %1666 = vmatpush3.bf16.msra.mxu0 %v1856_v17 }
  0x5d   : > { %1747 = vmatprep.subr.bf16.mxu1 %v1891_v1  ;;  %1667 = vmatprep.subr.bf16.mxu0 %v1891_v1 }
  0x60   : > { %1748 = vmatpush3.bf16.msra.mxu1 %v1857_v18  ;;  %1668 = vmatpush3.bf16.msra.mxu0 %v1858_v19 }
  0x61   : > { %1749 = vmatprep.subr.bf16.mxu1 %v1891_v1  ;;  %1669 = vmatprep.subr.bf16.mxu0 %v1891_v1 }
  0x64   : > { %1750 = vmatpush3.bf16.msra.mxu1 %v1859_v20  ;;  %1670 = vmatpush3.bf16.msra.mxu0 %v1860_v21 }
  0x65   : > { %1755 = vmatprep.subr.bf16.mxu1 %v1891_v1  ;;  %1695 = vmatprep.subr.bf16.mxu0 %v1891_v1 }
  0x67   : > { %1752 = vmatmul.mubr.bf16.vlgmr.msra.gmra.mrb[8].mxu1 %v1862_v22  ;;  %1672 = vmatmul.mubr.bf16.vlgmr.msra.gmra.mrb[8].mxu0 %v2096_v2 }
  0x68   : > { %1756 = vmatpush3.bf16.msra.mxu1 %v1863_v23  ;;  %1696 = vmatpush3.bf16.msra.mxu0 %v1864_v24 }
  0x69   : > { %1757 = vmatprep.subr.bf16.mxu1 %v1891_v1  ;;  %1697 = vmatprep.subr.bf16.mxu0 %v1891_v1 }
  0x6a   : > { %1771 = vmatprep.mubr.msk.bf16.mxu1 %vm1893_vm0, %v1891_v1  ;;  %1711 = vmatprep.mubr.msk.bf16.mxu0 %vm1893_vm0, %v1891_v1 }
  0x6c   : > { %1758 = vmatpush3.bf16.msra.mxu1 %v1865_v25  ;;  %1698 = vmatpush3.bf16.msra.mxu0 %v1866_v26 }
  0x6d   : > { %1759 = vmatprep.subr.bf16.mxu1 %v1891_v1  ;;  %1699 = vmatprep.subr.bf16.mxu0 %v1891_v1 }
  0x70   : > { %1760 = vmatpush3.bf16.msra.mxu1 %v1867_v27  ;;  %1700 = vmatpush3.bf16.msra.mxu0 %v1868_v28 }
  0x71   : > { %1761 = vmatprep.subr.bf16.mxu1 %v1891_v1  ;;  %1701 = vmatprep.subr.bf16.mxu0 %v1891_v1 }
  0x74   : > { %1762 = vmatpush3.bf16.msra.mxu1 %v1869_v29  ;;  %1702 = vmatpush3.bf16.msra.mxu0 %v1870_v30 }
  0x75   : > { %1763 = vmatprep.subr.bf16.mxu1 %v1891_v1  ;;  %1703 = vmatprep.subr.bf16.mxu0 %v1891_v1 }
  0x78   : > { %1764 = vmatpush3.bf16.msra.mxu1 %v1871_v31  ;;  %1704 = vmatpush3.bf16.msra.mxu0 %v1872_v32 }
  0x79   : > { %1765 = vmatprep.subr.bf16.mxu1 %v1891_v1  ;;  %1705 = vmatprep.subr.bf16.mxu0 %v1891_v1 }
  0x7c   : > { %1766 = vmatpush3.bf16.msra.mxu1 %v1873_v33  ;;  %1706 = vmatpush3.bf16.msra.mxu0 %v1874_v34 }
  0x7d   : > { %1767 = vmatprep.subr.bf16.mxu1 %v1891_v1  ;;  %1707 = vmatprep.subr.bf16.mxu0 %v1891_v1 }
  0x80   : > { %1768 = vmatpush3.bf16.msra.mxu1 %v1875_v36  ;;  %1708 = vmatpush3.bf16.msra.mxu0 %v1876_v39 }
  0x81   : > { %1769 = vmatprep.subr.bf16.mxu1 %v1891_v1  ;;  %1709 = vmatprep.subr.bf16.mxu0 %v1891_v1 }
  0x84   : > { %1770 = vmatpush3.bf16.msra.mxu1 %v1877_v42  ;;  %1710 = vmatpush3.bf16.msra.mxu0 %v1878_v45 }
  0x87   : > { %1772 = vmatmul.mubr.bf16.vlgmr.msra.gmra.mrb[8].mxu1 %v1157_v48  ;;  %1712 = vmatmul.mubr.bf16.vlgmr.msra.gmra.mrb[12].mxu0 %v776_v49 }
  0xfa   : > { %v708_v50 = vpop.f32.mrb[0].mxu1  ;;  %v434_v51 = vpop.f32.mrb[0].mxu0 }
  0xfb   : > { %v1693_v52 = vpop.f32.mrb[1].mxu1  ;;  %v436_v53 = vpop.f32.mrb[1].mxu0 }
  0xfc   : > { %v711_v54 = vpop.f32.mrb[2].mxu1  ;;  %v438_v55 = vpop.f32.mrb[2].mxu0 }
  0xfd   : > { %v1694_v56 = vpop.f32.mrb[3].mxu1  ;;  %v440_v57 = vpop.f32.mrb[3].mxu0 }
 0x11a   : > { %v973_v58 = vpop.f32.mrb[4].mxu1  ;;  %v477_v59 = vpop.f32.mrb[4].mxu0 }
 0x11b   : > { %v1733_v60 = vpop.f32.mrb[5].mxu1  ;;  %v1653_v61 = vpop.f32.mrb[5].mxu0 }
 0x11c   : > { %v976_v1 = vpop.f32.mrb[6].mxu1  ;;  %v480_v62 = vpop.f32.mrb[6].mxu0 }
 0x11d   : > { %v1734_v63 = vpop.f32.mrb[7].mxu1  ;;  %v1654_v0 = vpop.f32.mrb[7].mxu0 }
 0x13a   : > { %v591_v2 = vpop.f32.mrb[8].mxu0 }
 0x13b   : > { %v598_v3 = vadd.f32 %v591_v2, %v434_v51  ;;  %v1673_v4 = vpop.f32.mrb[9].mxu0 }
 0x13c   : > { %v594_v5 = vpop.f32.mrb[10].mxu0 }
 0x13d   : > { %v715_v6 = vadd.f32 %v708_v50, %v598_v3  ;;  %v599_v7 = vadd.f32 %v594_v5, %v438_v55  ;;  %v1674_v8 = vpop.f32.mrb[11].mxu0 }
 0x13f   : > { %v716_v9 = vadd.f32 %v711_v54, %v599_v7  ;;  %v735_v10 = vmul.f32 %v715_v6, %v715_v6 }
 0x141   : > { %v1558_v11 = vpack.c.bf16 %v716_v9, %v715_v6  ;;  %v727_v12 = vadd.f32 %v716_v9, %v715_v6  ;;  %v736_v13 = vmul.f32 %v716_v9, %v716_v9 }
 0x143   : > { %1559 = vst [vmem:[%s2253_s28] sm:$0xff] %v1558_v11   ;;  %v728_v14 = vrot.slane %v727_v12, 4  ;;  %v737_v15 = vadd.f32 %v736_v13, %v735_v10 }
 0x145   : > { %v729_v16 = vadd.f32 %v728_v14, %v727_v12  ;;  %v738_v17 = vrot.slane %v737_v15, 4 }
 0x147   : > { %v730_v18 = vrot.slane %v729_v16, 2  ;;  %v739_v19 = vadd.f32 %v738_v17, %v737_v15 }
 0x149   : > { %v731_v20 = vadd.f32 %v730_v18, %v729_v16  ;;  %v740_v21 = vrot.slane %v739_v19, 2 }
 0x14b   : > { %v732_v22 = vrot.slane %v731_v20, 1  ;;  %v741_v23 = vadd.f32 %v740_v21, %v739_v19 }
 0x14d   : > { %v733_v24 = vadd.f32 %v732_v22, %v731_v20  ;;  %v742_v25 = vrot.slane %v741_v23, 1 }
 0x14f   : > { %734 = vst [vmem:[%s2260_s6] sm:$0x1] %v733_v24  ;;  %v743_v26 = vadd.f32 %v742_v25, %v741_v23 }
 0x151   : > { %744 = vst [vmem:[%s2260_s6 + $0x1] sm:$0x1] %v743_v26 }
 0x15a   : > { %v1241_v27 = vpop.f32.mrb[8].mxu1  ;;  %v860_v29 = vpop.f32.mrb[12].mxu0 }
 0x15b   : > { %v1775_v28 = vadd.f32 %v1241_v27, %v477_v59  ;;  %v1773_v30 = vpop.f32.mrb[9].mxu1  ;;  %v867_v31 = vadd.f32 %v860_v29, %v436_v53  ;;  %v1713_v32 = vpop.f32.mrb[13].mxu0 }
 0x15c   : > { %v1244_v33 = vpop.f32.mrb[10].mxu1  ;;  %v863_v35 = vpop.f32.mrb[14].mxu0 }
 0x15d   : > { %v1776_v34 = vadd.f32 %v1244_v33, %v480_v62  ;;  %v1774_v36 = vpop.f32.mrb[11].mxu1  ;;  %v980_v37 = vadd.f32 %v973_v58, %v867_v31  ;;  %v868_v38 = vadd.f32 %v863_v35, %v440_v57  ;;  %v1714_v39 = vpop.f32.mrb[15].mxu0  ;;  %v1269_v40 = vmul.f32 %v1775_v28, %v1775_v28 }
 0x15f   : > { %v1568_v41 = vpack.c.bf16 %v1776_v34, %v1775_v28  ;;  %v1261_v42 = vadd.f32 %v1776_v34, %v1775_v28  ;;  %v1270_v43 = vmul.f32 %v1776_v34, %v1776_v34  ;;  %v981_v44 = vadd.f32 %v976_v1, %v868_v38 }
 0x160   : > { %v1001_v47 = vmul.f32 %v980_v37, %v980_v37 }
 0x161   : > { %1571 = vst [vmem:[%s2253_s28 + $0x10] sm:$0xff] %v1568_v41   ;;  %v1262_v45 = vrot.slane %v1261_v42, 4  ;;  %v1271_v46 = vadd.f32 %v1270_v43, %v1269_v40  ;;  %v1563_v48 = vpack.c.bf16 %v981_v44, %v980_v37  ;;  %v993_v49 = vadd.f32 %v981_v44, %v980_v37 }
 0x162   : > { %v1002_v50 = vmul.f32 %v981_v44, %v981_v44 }
 0x163   : > { %v1263_v51 = vadd.f32 %v1262_v45, %v1261_v42  ;;  %v1272_v52 = vrot.slane %v1271_v46, 4  ;;  %1570 = vst [vmem:[%s2253_s28 + $0x8] sm:$0xff] %v1563_v48   ;;  %v994_v53 = vrot.slane %v993_v49, 4 }
 0x164   : > { %v1003_v54 = vadd.f32 %v1002_v50, %v1001_v47 }
 0x165   : > { %v1264_v55 = vrot.slane %v1263_v51, 2  ;;  %v1273_v56 = vadd.f32 %v1272_v52, %v1271_v46  ;;  %v995_v57 = vadd.f32 %v994_v53, %v993_v49 }
 0x166   : > { %v1004_v58 = vrot.slane %v1003_v54, 4 }
 0x167   : > { %v1265_v59 = vadd.f32 %v1264_v55, %v1263_v51  ;;  %v1274_v60 = vrot.slane %v1273_v56, 2  ;;  %v996_v61 = vrot.slane %v995_v57, 2 }
 0x168   : > { %v1005_v1 = vadd.f32 %v1004_v58, %v1003_v54 }
 0x169   : > { %v1266_v62 = vrot.slane %v1265_v59, 1  ;;  %v1275_v63 = vadd.f32 %v1274_v60, %v1273_v56  ;;  %v997_v0 = vadd.f32 %v996_v61, %v995_v57 }
 0x16a   : > { %v1006_v2 = vrot.slane %v1005_v1, 2 }
 0x16b   : > { %v1267_v3 = vadd.f32 %v1266_v62, %v1265_v59  ;;  %v1276_v4 = vrot.slane %v1275_v63, 1  ;;  %v998_v5 = vrot.slane %v997_v0, 1 }
 0x16c   : > { %v1007_v6 = vadd.f32 %v1006_v2, %v1005_v1 }
 0x16d   : > { %1268 = vst [vmem:[%s2260_s6 + $0x4] sm:$0x1] %v1267_v3  ;;  %v1277_v7 = vadd.f32 %v1276_v4, %v1275_v63  ;;  %v999_v8 = vadd.f32 %v998_v5, %v997_v0 }
 0x16e   : > { %v1008_v9 = vrot.slane %v1007_v6, 1 }
 0x16f   : > { %1278 = vst [vmem:[%s2260_s6 + $0x5] sm:$0x1] %v1277_v7  ;;  %1000 = vst [vmem:[%s2260_s6 + $0x2] sm:$0x1] %v999_v8 }
 0x170   : > { %v1009_v10 = vadd.f32 %v1008_v9, %v1007_v6 }
 0x172   : > { %1010 = vst [vmem:[%s2260_s6 + $0x3] sm:$0x1] %v1009_v10 }
 0x173 PF: > { %s15_s15 = sadd.s32 1, %s1889_s15  }
 0x174   : > { %p12_p4 = scmp.ge.s32.totalorder %s15_s15, 4  }
 0x176   :  { %14 = sbr.rel (!%p12_p4) target bundleno = 1 (0x1), region = 81 }

</bundles_post_ra>
